<compile_context>
chip_gen: v6e
topology: v6e:2x2x1
jax: 0.10.0
libtpu: 0.0.40
codegen_flags: <defaults>
</compile_context>

<pallas_src>
import jax
import jax.numpy as jnp
from jax.experimental import pallas as pl
from jax.experimental.pallas import tpu as pltpu


# ----------------------------------------------------------------------------
# Kernel
# ----------------------------------------------------------------------------
def _shift_zero(v, d, axis):
    """out[..., i, ...] = v[..., i + d, ...]; zero where i + d is out of range."""
    if d == 0:
        return v
    n = v.shape[axis]
    pad_shape = list(v.shape)
    pad_shape[axis] = abs(d)
    zeros = jnp.zeros(pad_shape, v.dtype)
    if d > 0:
        body = jax.lax.slice_in_dim(v, d, n, axis=axis)
        return jnp.concatenate([body, zeros], axis=axis)
    body = jax.lax.slice_in_dim(v, 0, n + d, axis=axis)
    return jnp.concatenate([zeros, body], axis=axis)


def _bottleneck_kernel(x_ref, w1_ref, w2_ref, w3_ref,
                       b1_ref, b2_ref, b3_ref, o_ref):
    """Fused bottleneck for a block of `batch_tile` images.

    x_ref:  (B, H, W, Cin)   f32 input tile (NHWC)
    w1_ref: (Cin, Cm)        bf16, BN1 scale folded in
    w2_ref: (9*Cm, Cm)       bf16, 3x3 taps flattened row-major (kh,kw,cin), BN2 folded
    w3_ref: (Cm, Cout)       bf16, BN3 scale folded in
    b*_ref: (1, C)           f32 folded BN biases
    o_ref:  (B, H, W, Cout)  f32 output tile
    """
    B, H, W, Cin = x_ref.shape
    Cm = w1_ref.shape[1]
    Cout = w3_ref.shape[1]
    M = B * H * W

    # ---- conv1 (1x1) + bn1 + relu : single MXU matmul over channels ---------
    # Cast to bf16 straight off the read; the f32 residual is re-read later so
    # the full-precision input tile is not held live across conv2.
    xb = x_ref[...].astype(jnp.bfloat16).reshape(M, Cin)
    h1 = jnp.dot(xb, w1_ref[...], preferred_element_type=jnp.float32)
    h1 = jnp.maximum(h1 + b1_ref[...], 0.0)          # (M, Cm) f32

    # ---- conv2 (3x3, stride 1, pad 1) + bn2 + relu ---------------------------
    # Build the 9-tap im2col operand via zero-boundary shifts (no VMEM scratch)
    # and run ONE matmul with K = 9*Cm.
    h1b = h1.astype(jnp.bfloat16).reshape(B, H, W, Cm)
    taps = []
    for dy in (-1, 0, 1):                            # kh = dy + 1
        row_shift = _shift_zero(h1b, dy, axis=1)
        for dx in (-1, 0, 1):                        # kw = dx + 1
            taps.append(_shift_zero(row_shift, dx, axis=2))
    patches = jnp.concatenate(taps, axis=-1).reshape(M, 9 * Cm)   # bf16
    h2 = jnp.dot(patches, w2_ref[...], preferred_element_type=jnp.float32)
    h2 = jnp.maximum(h2 + b2_ref[...], 0.0)          # (M, Cm) f32

    # ---- conv3 (1x1) + bn3 ---------------------------------------------------
    h3 = jnp.dot(h2.astype(jnp.bfloat16), w3_ref[...],
                 preferred_element_type=jnp.float32)
    h3 = h3 + b3_ref[...]

    # ---- identity residual + last relu (all f32) -----------------------------
    # Re-read the input block from VMEM here (short residual live range).
    res = x_ref[...].reshape(M, Cout)
    out = jnp.maximum(h3 + res, 0.0)
    o_ref[...] = out.reshape(B, H, W, Cout).astype(o_ref.dtype)


# ----------------------------------------------------------------------------
# Tiling helpers
# ----------------------------------------------------------------------------
_ROW_TARGET = 1024   # matmul rows per grid step (review: 512-1024)


def _tile_vmem_bytes(bt, h, w, cin, cm, cout):
    """Rough per-grid-step VMEM footprint (double-buffered I/O + temporaries)."""
    m = bt * h * w
    in_tile = m * cin * 4
    out_tile = m * cout * 4
    temps = m * (cm * 4            # h1 f32
                 + 9 * cm * 2 * 2  # taps + patches bf16
                 + cm * 4          # h2 f32
                 + cout * 4)       # h3 f32
    weights = (cin * cm + 9 * cm * cm + cm * cout) * 2 + (2 * cm + cout) * 4
    return 2 * in_tile + 2 * out_tile + temps + weights


def _vmem_budget_bytes():
    """Half of physical VMEM (headroom for compiler scratch / pipelining).

    Falls back to a v7x-sized 64 MiB capacity when the hardware query is
    unavailable, so tiles picked here are safe on every generation.
    """
    try:
        cap = int(pltpu.get_tpu_info().vmem_capacity_bytes)
    except Exception:
        cap = 64 << 20
    return cap // 2


def _pick_batch_tile(n, h, w, cin, cm, cout, vmem_budget):
    """Largest divisor of n with ~_ROW_TARGET matmul rows per step, fitting the
    VMEM budget, and keeping >= 2 grid steps (v7x megacore) when n >= 2."""
    hw = h * w
    bt = max(1, min(n, _ROW_TARGET // max(1, hw)))
    if n >= 2:
        bt = max(1, min(bt, n // 2))     # grid length >= 2 -> both TCs on v7x
    while bt > 1 and (n % bt != 0
                      or _tile_vmem_bytes(bt, h, w, cin, cm, cout) > vmem_budget):
        bt -= 1
    return bt


# ----------------------------------------------------------------------------
# Wrappers
# ----------------------------------------------------------------------------
def bottleneck_forward_nhwc(x_nhwc, params, *, batch_tile=None):
    """NHWC-native fused bottleneck.  params = (w1, w2_hwio, w3, s1, b1, s2, b2, s3, b3)."""
    w1, w2_hwio, w3, s1, b1, s2, b2, s3, b3 = params
    x = x_nhwc.astype(jnp.float32)
    N, H, W, Cin = x.shape
    Cm = w1.shape[1]
    Cout = w3.shape[1]
    if Cin != Cout:
        # TODO(synk): downsample residual branch (inplanes != planes) not implemented.
        raise ValueError("identity residual requires inplanes == planes")

    # Fold BN scales into the conv weights; cast MXU operands to bf16.
    w1f = (w1 * s1.reshape(1, Cm)).astype(jnp.bfloat16)
    w2f = (w2_hwio * s2.reshape(1, 1, 1, Cm)).astype(jnp.bfloat16).reshape(9 * Cm, Cm)
    w3f = (w3 * s3.reshape(1, Cout)).astype(jnp.bfloat16)
    b1f = b1.reshape(1, Cm).astype(jnp.float32)
    b2f = b2.reshape(1, Cm).astype(jnp.float32)
    b3f = b3.reshape(1, Cout).astype(jnp.float32)

    vmem_budget = _vmem_budget_bytes()
    if batch_tile is None:
        batch_tile = _pick_batch_tile(N, H, W, Cin, Cm, Cout, vmem_budget)
    if N % batch_tile != 0:
        raise ValueError(
            f"batch_tile={batch_tile} must divide batch N={N} "
            "(otherwise the tail images would silently be dropped)")
    grid = (N // batch_tile,)

    flops = 2 * N * H * W * (Cin * Cm + 9 * Cm * Cm + Cm * Cout)
    bytes_accessed = (x.size * 4 + N * H * W * Cout * 4
                      + (w1f.size + w2f.size + w3f.size) * 2
                      + (b1f.size + b2f.size + b3f.size) * 4)

    out_nhwc = pl.pallas_call(
        _bottleneck_kernel,
        out_shape=jax.ShapeDtypeStruct((N, H, W, Cout), x.dtype),
        grid_spec=pltpu.PrefetchScalarGridSpec(
            num_scalar_prefetch=0,
            grid=grid,
            in_specs=[
                pl.BlockSpec((batch_tile, H, W, Cin), lambda n: (n, 0, 0, 0)),
                pl.BlockSpec((Cin, Cm), lambda n: (0, 0)),
                pl.BlockSpec((9 * Cm, Cm), lambda n: (0, 0)),
                pl.BlockSpec((Cm, Cout), lambda n: (0, 0)),
                pl.BlockSpec((1, Cm), lambda n: (0, 0)),
                pl.BlockSpec((1, Cm), lambda n: (0, 0)),
                pl.BlockSpec((1, Cout), lambda n: (0, 0)),
            ],
            out_specs=pl.BlockSpec((batch_tile, H, W, Cout),
                                   lambda n: (n, 0, 0, 0)),
        ),
        compiler_params=pltpu.CompilerParams(
            dimension_semantics=("parallel",),
            vmem_limit_bytes=int(vmem_budget)),
        cost_estimate=pl.CostEstimate(
            flops=int(flops), transcendentals=0,
            bytes_accessed=int(bytes_accessed)),
    )(x, w1f, w2f, w3f, b1f, b2f, b3f)
    return out_nhwc


def bottleneck_forward(x_nchw, params, *, batch_tile=None):
    """NCHW compatibility wrapper (PyTorch layout).  Prefer the NHWC entry point
    for chained blocks so activations are not transposed through HBM per block."""
    x = jnp.transpose(x_nchw, (0, 2, 3, 1))                       # NCHW -> NHWC
    out = bottleneck_forward_nhwc(x, params, batch_tile=batch_tile)
    return jnp.transpose(out, (0, 3, 1, 2))                       # NHWC -> NCHW


# ----------------------------------------------------------------------------
# Parameters + pure-JAX reference
# ----------------------------------------------------------------------------
def init_params(key, inplanes, planes):
    """Deterministic synthetic parameters (folded inference BatchNorm)."""
    expansion = 4
    cm = planes // expansion
    k1, k2, k3 = jax.random.split(key, 3)
    w1 = 0.1 * jax.random.normal(k1, (inplanes, cm), jnp.float32)    # conv1 (Cin, Cm)
    w2 = 0.1 * jax.random.normal(k2, (3, 3, cm, cm), jnp.float32)    # conv2 HWIO
    w3 = 0.1 * jax.random.normal(k3, (cm, planes), jnp.float32)      # conv3 (Cm, Cout)

    eps = 1e-5

    def folded_bn(c):
        r = jnp.arange(c, dtype=jnp.float32) / c
        gamma = 1.0 + 0.1 * r
        beta = 0.05 * r - 0.02
        mean = 0.01 * r
        var = 1.0 + 0.02 * r
        scale = gamma / jnp.sqrt(var + eps)
        bias = beta - mean * scale
        return scale.reshape(1, c), bias.reshape(1, c)

    s1, b1 = folded_bn(cm)
    s2, b2 = folded_bn(cm)
    s3, b3 = folded_bn(planes)
    return (w1, w2, w3, s1, b1, s2, b2, s3, b3)


def reference_forward_nhwc(x_nhwc, params):
    """Pure-JAX reference mirroring the kernel math (bf16 MXU operands, f32 acc)."""
    w1, w2, w3, s1, b1, s2, b2, s3, b3 = params
    x = x_nhwc.astype(jnp.float32)
    dn = ('NHWC', 'HWIO', 'NHWC')
    cin, cm = w1.shape
    cout = w3.shape[1]

    w1f = (w1 * s1.reshape(1, cm)).astype(jnp.bfloat16).reshape(1, 1, cin, cm)
    w2f = (w2 * s2.reshape(1, 1, 1, cm)).astype(jnp.bfloat16)
    w3f = (w3 * s3.reshape(1, cout)).astype(jnp.bfloat16).reshape(1, 1, cm, cout)

    h = jax.lax.conv_general_dilated(
        x.astype(jnp.bfloat16), w1f, (1, 1), ((0, 0), (0, 0)),
        dimension_numbers=dn, preferred_element_type=jnp.float32)
    h = jnp.maximum(h + b1.reshape(1, 1, 1, -1), 0.0)
    h = jax.lax.conv_general_dilated(
        h.astype(jnp.bfloat16), w2f, (1, 1), ((1, 1), (1, 1)),
        dimension_numbers=dn, preferred_element_type=jnp.float32)
    h = jnp.maximum(h + b2.reshape(1, 1, 1, -1), 0.0)
    h = jax.lax.conv_general_dilated(
        h.astype(jnp.bfloat16), w3f, (1, 1), ((0, 0), (0, 0)),
        dimension_numbers=dn, preferred_element_type=jnp.float32)
    h = h + b3.reshape(1, 1, 1, -1)
    return jnp.maximum(h + x, 0.0)


if __name__ == "__main__":
    key = jax.random.PRNGKey(0)
    k_x, k_p = jax.random.split(key)

    N, inplanes, H, W = 2, 64, 8, 8
    planes = 64                       # identity residual: inplanes == planes

    x_nchw = jax.random.normal(k_x, (N, inplanes, H, W), jnp.float32)   # NCHW
    params = init_params(k_p, inplanes, planes)

    # Production path: NHWC in / NHWC out (no layout transposes around the kernel).
    x_nhwc = jnp.transpose(x_nchw, (0, 2, 3, 1))
    out_nhwc = jax.block_until_ready(bottleneck_forward_nhwc(x_nhwc, params))
    ref_nhwc = reference_forward_nhwc(x_nhwc, params)
    assert out_nhwc.shape == (N, H, W, planes), out_nhwc.shape
    assert bool(jnp.all(jnp.isfinite(out_nhwc)))
    assert jnp.allclose(out_nhwc, ref_nhwc, rtol=2e-3, atol=2e-3), float(
        jnp.max(jnp.abs(out_nhwc - ref_nhwc)))

    # PyTorch-module-compatible path: NCHW in / NCHW out.
    out_nchw = jax.block_until_ready(bottleneck_forward(x_nchw, params))
    ref_nchw = jnp.transpose(ref_nhwc, (0, 3, 1, 2))
    assert out_nchw.shape == (N, planes, H, W), out_nchw.shape
    assert jnp.allclose(out_nchw, ref_nchw, rtol=2e-3, atol=2e-3), float(
        jnp.max(jnp.abs(out_nchw - ref_nchw)))

    print("KERNEL_OK")
</pallas_src>

<mosaic_0001>
module attributes {stable_mosaic.version = 11 : i64} {
  func.func @_bottleneck_kernel(%arg0: i32, %arg1: memref<1x8x8x64xf32, #tpu.memory_space<vmem>>, %arg2: memref<64x16xbf16, #tpu.memory_space<vmem>>, %arg3: memref<144x16xbf16, #tpu.memory_space<vmem>>, %arg4: memref<16x64xbf16, #tpu.memory_space<vmem>>, %arg5: memref<1x16xf32, #tpu.memory_space<vmem>>, %arg6: memref<1x16xf32, #tpu.memory_space<vmem>>, %arg7: memref<1x64xf32, #tpu.memory_space<vmem>>, %arg8: memref<1x8x8x64xf32, #tpu.memory_space<vmem>>) attributes {dimension_semantics = [#tpu.dimension_semantics<parallel>], iteration_bounds = array<i64: 2>, scalar_prefetch = 0 : i64, scratch_operands = 0 : i64, tpu.core_type = #tpu.core_type<tc>, window_params = [{transform_indices = @transform_0, window_bounds = array<i64: 1, 8, 8, 64>}, {pipeline_mode = #tpu.pipeline_mode<synchronous>, transform_indices = @transform_1, window_bounds = array<i64: 64, 16>}, {pipeline_mode = #tpu.pipeline_mode<synchronous>, transform_indices = @transform_2, window_bounds = array<i64: 144, 16>}, {pipeline_mode = #tpu.pipeline_mode<synchronous>, transform_indices = @transform_3, window_bounds = array<i64: 16, 64>}, {pipeline_mode = #tpu.pipeline_mode<synchronous>, transform_indices = @transform_4, window_bounds = array<i64: 1, 16>}, {pipeline_mode = #tpu.pipeline_mode<synchronous>, transform_indices = @transform_5, window_bounds = array<i64: 1, 16>}, {pipeline_mode = #tpu.pipeline_mode<synchronous>, transform_indices = @transform_6, window_bounds = array<i64: 1, 64>}, {transform_indices = @transform_7, window_bounds = array<i64: 1, 8, 8, 64>}]} {
    %c0 = arith.constant 0 : index
    %c0_0 = arith.constant 0 : index
    %c0_1 = arith.constant 0 : index
    %c0_2 = arith.constant 0 : index
    %0 = vector.load %arg1[%c0, %c0_0, %c0_1, %c0_2] : memref<1x8x8x64xf32, #tpu.memory_space<vmem>>, vector<1x8x8x64xf32>
    %1 = arith.truncf %0 : vector<1x8x8x64xf32> to vector<1x8x8x64xbf16>
    %2 = vector.shape_cast %1 : vector<1x8x8x64xbf16> to vector<64x64xbf16>
    %c0_3 = arith.constant 0 : index
    %c0_4 = arith.constant 0 : index
    %3 = vector.load %arg2[%c0_3, %c0_4] : memref<64x16xbf16, #tpu.memory_space<vmem>>, vector<64x16xbf16>
    %cst = arith.constant dense<0.000000e+00> : vector<64x16xf32>
    %4 = tpu.matmul %2, %3, %cst {dimension_numbers = #tpu.dot_dimension_numbers<[1], [0], [0], [1], [0, 0, 1, 1], [], []>} : vector<64x64xbf16>, vector<64x16xbf16>, vector<64x16xf32> -> vector<64x16xf32>
    %c0_5 = arith.constant 0 : index
    %c0_6 = arith.constant 0 : index
    %5 = vector.load %arg5[%c0_5, %c0_6] : memref<1x16xf32, #tpu.memory_space<vmem>>, vector<1x16xf32>
    %6 = vector.broadcast %5 : vector<1x16xf32> to vector<64x16xf32>
    %7 = arith.addf %4, %6 : vector<64x16xf32>
    %cst_7 = arith.constant 0.000000e+00 : f32
    %8 = vector.broadcast %cst_7 : f32 to vector<64x16xf32>
    %9 = arith.maximumf %7, %8 : vector<64x16xf32>
    %10 = arith.truncf %9 : vector<64x16xf32> to vector<64x16xbf16>
    %11 = vector.shape_cast %10 : vector<64x16xbf16> to vector<1x8x8x16xbf16>
    %cst_8 = arith.constant 0.000000e+00 : bf16
    %12 = vector.broadcast %cst_8 : bf16 to vector<1x1x8x16xbf16>
    %13 = vector.extract_strided_slice %11 {offsets = [0, 0, 0, 0], sizes = [1, 7, 8, 16], strides = [1, 1, 1, 1]} : vector<1x8x8x16xbf16> to vector<1x7x8x16xbf16>
    %14 = tpu.concatenate %12, %13 in 1 : vector<1x1x8x16xbf16>, vector<1x7x8x16xbf16> -> vector<1x8x8x16xbf16>
    %cst_9 = arith.constant 0.000000e+00 : bf16
    %15 = vector.broadcast %cst_9 : bf16 to vector<1x8x1x16xbf16>
    %16 = vector.extract_strided_slice %14 {offsets = [0, 0, 0, 0], sizes = [1, 8, 7, 16], strides = [1, 1, 1, 1]} : vector<1x8x8x16xbf16> to vector<1x8x7x16xbf16>
    %17 = tpu.concatenate %15, %16 in 2 : vector<1x8x1x16xbf16>, vector<1x8x7x16xbf16> -> vector<1x8x8x16xbf16>
    %cst_10 = arith.constant 0.000000e+00 : bf16
    %18 = vector.broadcast %cst_10 : bf16 to vector<1x8x1x16xbf16>
    %19 = vector.extract_strided_slice %14 {offsets = [0, 0, 1, 0], sizes = [1, 8, 7, 16], strides = [1, 1, 1, 1]} : vector<1x8x8x16xbf16> to vector<1x8x7x16xbf16>
    %20 = tpu.concatenate %19, %18 in 2 : vector<1x8x7x16xbf16>, vector<1x8x1x16xbf16> -> vector<1x8x8x16xbf16>
    %cst_11 = arith.constant 0.000000e+00 : bf16
    %21 = vector.broadcast %cst_11 : bf16 to vector<1x8x1x16xbf16>
    %22 = vector.extract_strided_slice %11 {offsets = [0, 0, 0, 0], sizes = [1, 8, 7, 16], strides = [1, 1, 1, 1]} : vector<1x8x8x16xbf16> to vector<1x8x7x16xbf16>
    %23 = tpu.concatenate %21, %22 in 2 : vector<1x8x1x16xbf16>, vector<1x8x7x16xbf16> -> vector<1x8x8x16xbf16>
    %cst_12 = arith.constant 0.000000e+00 : bf16
    %24 = vector.broadcast %cst_12 : bf16 to vector<1x8x1x16xbf16>
    %25 = vector.extract_strided_slice %11 {offsets = [0, 0, 1, 0], sizes = [1, 8, 7, 16], strides = [1, 1, 1, 1]} : vector<1x8x8x16xbf16> to vector<1x8x7x16xbf16>
    %26 = tpu.concatenate %25, %24 in 2 : vector<1x8x7x16xbf16>, vector<1x8x1x16xbf16> -> vector<1x8x8x16xbf16>
    %cst_13 = arith.constant 0.000000e+00 : bf16
    %27 = vector.broadcast %cst_13 : bf16 to vector<1x1x8x16xbf16>
    %28 = vector.extract_strided_slice %11 {offsets = [0, 1, 0, 0], sizes = [1, 7, 8, 16], strides = [1, 1, 1, 1]} : vector<1x8x8x16xbf16> to vector<1x7x8x16xbf16>
    %29 = tpu.concatenate %28, %27 in 1 : vector<1x7x8x16xbf16>, vector<1x1x8x16xbf16> -> vector<1x8x8x16xbf16>
    %cst_14 = arith.constant 0.000000e+00 : bf16
    %30 = vector.broadcast %cst_14 : bf16 to vector<1x8x1x16xbf16>
    %31 = vector.extract_strided_slice %29 {offsets = [0, 0, 0, 0], sizes = [1, 8, 7, 16], strides = [1, 1, 1, 1]} : vector<1x8x8x16xbf16> to vector<1x8x7x16xbf16>
    %32 = tpu.concatenate %30, %31 in 2 : vector<1x8x1x16xbf16>, vector<1x8x7x16xbf16> -> vector<1x8x8x16xbf16>
    %cst_15 = arith.constant 0.000000e+00 : bf16
    %33 = vector.broadcast %cst_15 : bf16 to vector<1x8x1x16xbf16>
    %34 = vector.extract_strided_slice %29 {offsets = [0, 0, 1, 0], sizes = [1, 8, 7, 16], strides = [1, 1, 1, 1]} : vector<1x8x8x16xbf16> to vector<1x8x7x16xbf16>
    %35 = tpu.concatenate %34, %33 in 2 : vector<1x8x7x16xbf16>, vector<1x8x1x16xbf16> -> vector<1x8x8x16xbf16>
    %36 = tpu.concatenate %17, %14, %20, %23, %11, %26, %32, %29, %35 in 3 : vector<1x8x8x16xbf16>, vector<1x8x8x16xbf16>, vector<1x8x8x16xbf16>, vector<1x8x8x16xbf16>, vector<1x8x8x16xbf16>, vector<1x8x8x16xbf16>, vector<1x8x8x16xbf16>, vector<1x8x8x16xbf16>, vector<1x8x8x16xbf16> -> vector<1x8x8x144xbf16>
    %37 = vector.shape_cast %36 : vector<1x8x8x144xbf16> to vector<64x144xbf16>
    %c0_16 = arith.constant 0 : index
    %c0_17 = arith.constant 0 : index
    %38 = vector.load %arg3[%c0_16, %c0_17] : memref<144x16xbf16, #tpu.memory_space<vmem>>, vector<144x16xbf16>
    %cst_18 = arith.constant dense<0.000000e+00> : vector<64x16xf32>
    %39 = tpu.matmul %37, %38, %cst_18 {dimension_numbers = #tpu.dot_dimension_numbers<[1], [0], [0], [1], [0, 0, 1, 1], [], []>} : vector<64x144xbf16>, vector<144x16xbf16>, vector<64x16xf32> -> vector<64x16xf32>
    %c0_19 = arith.constant 0 : index
    %c0_20 = arith.constant 0 : index
    %40 = vector.load %arg6[%c0_19, %c0_20] : memref<1x16xf32, #tpu.memory_space<vmem>>, vector<1x16xf32>
    %41 = vector.broadcast %40 : vector<1x16xf32> to vector<64x16xf32>
    %42 = arith.addf %39, %41 : vector<64x16xf32>
    %cst_21 = arith.constant 0.000000e+00 : f32
    %43 = vector.broadcast %cst_21 : f32 to vector<64x16xf32>
    %44 = arith.maximumf %42, %43 : vector<64x16xf32>
    %45 = arith.truncf %44 : vector<64x16xf32> to vector<64x16xbf16>
    %c0_22 = arith.constant 0 : index
    %c0_23 = arith.constant 0 : index
    %46 = vector.load %arg4[%c0_22, %c0_23] : memref<16x64xbf16, #tpu.memory_space<vmem>>, vector<16x64xbf16>
    %cst_24 = arith.constant dense<0.000000e+00> : vector<64x64xf32>
    %47 = tpu.matmul %45, %46, %cst_24 {dimension_numbers = #tpu.dot_dimension_numbers<[1], [0], [0], [1], [0, 0, 1, 1], [], []>} : vector<64x16xbf16>, vector<16x64xbf16>, vector<64x64xf32> -> vector<64x64xf32>
    %c0_25 = arith.constant 0 : index
    %c0_26 = arith.constant 0 : index
    %48 = vector.load %arg7[%c0_25, %c0_26] : memref<1x64xf32, #tpu.memory_space<vmem>>, vector<1x64xf32>
    %49 = vector.broadcast %48 : vector<1x64xf32> to vector<64x64xf32>
    %50 = arith.addf %47, %49 : vector<64x64xf32>
    %c0_27 = arith.constant 0 : index
    %c0_28 = arith.constant 0 : index
    %c0_29 = arith.constant 0 : index
    %c0_30 = arith.constant 0 : index
    %51 = vector.load %arg1[%c0_27, %c0_28, %c0_29, %c0_30] : memref<1x8x8x64xf32, #tpu.memory_space<vmem>>, vector<1x8x8x64xf32>
    %52 = vector.shape_cast %51 : vector<1x8x8x64xf32> to vector<64x64xf32>
    %53 = arith.addf %50, %52 : vector<64x64xf32>
    %cst_31 = arith.constant 0.000000e+00 : f32
    %54 = vector.broadcast %cst_31 : f32 to vector<64x64xf32>
    %55 = arith.maximumf %53, %54 : vector<64x64xf32>
    %56 = vector.shape_cast %55 : vector<64x64xf32> to vector<1x8x8x64xf32>
    %c0_32 = arith.constant 0 : index
    %c0_33 = arith.constant 0 : index
    %c0_34 = arith.constant 0 : index
    %c0_35 = arith.constant 0 : index
    %57 = vector.load %arg8[%c0_32, %c0_33, %c0_34, %c0_35] : memref<1x8x8x64xf32, #tpu.memory_space<vmem>>, vector<1x8x8x64xf32>
    tpu.vector_store %arg8[%c0_32, %c0_33, %c0_34, %c0_35], %56 {strides = array<i32>} : memref<1x8x8x64xf32, #tpu.memory_space<vmem>>, vector<1x8x8x64xf32>,
    return
  }
  func.func @transform_0(%arg0: i32) -> (i32, i32, i32, i32) {
    %c0_i32 = arith.constant 0 : i32
    %c0_i32_0 = arith.constant 0 : i32
    %c0_i32_1 = arith.constant 0 : i32
    %c0_i32_2 = arith.constant 0 : i32
    return %arg0, %c0_i32, %c0_i32_0, %c0_i32_1 : i32, i32, i32, i32
  }
  func.func @transform_1(%arg0: i32) -> (i32, i32) {
    %c0_i32 = arith.constant 0 : i32
    %c0_i32_0 = arith.constant 0 : i32
    %c0_i32_1 = arith.constant 0 : i32
    return %c0_i32, %c0_i32_0 : i32, i32
  }
  func.func @transform_2(%arg0: i32) -> (i32, i32) {
    %c0_i32 = arith.constant 0 : i32
    %c0_i32_0 = arith.constant 0 : i32
    %c0_i32_1 = arith.constant 0 : i32
    return %c0_i32, %c0_i32_0 : i32, i32
  }
  func.func @transform_3(%arg0: i32) -> (i32, i32) {
    %c0_i32 = arith.constant 0 : i32
    %c0_i32_0 = arith.constant 0 : i32
    %c0_i32_1 = arith.constant 0 : i32
    return %c0_i32, %c0_i32_0 : i32, i32
  }
  func.func @transform_4(%arg0: i32) -> (i32, i32) {
    %c0_i32 = arith.constant 0 : i32
    %c0_i32_0 = arith.constant 0 : i32
    %c0_i32_1 = arith.constant 0 : i32
    return %c0_i32, %c0_i32_0 : i32, i32
  }
  func.func @transform_5(%arg0: i32) -> (i32, i32) {
    %c0_i32 = arith.constant 0 : i32
    %c0_i32_0 = arith.constant 0 : i32
    %c0_i32_1 = arith.constant 0 : i32
    return %c0_i32, %c0_i32_0 : i32, i32
  }
  func.func @transform_6(%arg0: i32) -> (i32, i32) {
    %c0_i32 = arith.constant 0 : i32
    %c0_i32_0 = arith.constant 0 : i32
    %c0_i32_1 = arith.constant 0 : i32
    return %c0_i32, %c0_i32_0 : i32, i32
  }
  func.func @transform_7(%arg0: i32) -> (i32, i32, i32, i32) {
    %c0_i32 = arith.constant 0 : i32
    %c0_i32_0 = arith.constant 0 : i32
    %c0_i32_1 = arith.constant 0 : i32
    %c0_i32_2 = arith.constant 0 : i32
    return %arg0, %c0_i32, %c0_i32_0, %c0_i32_1 : i32, i32, i32, i32
  }
}

</mosaic_0001>

<bundles_post_ra>
// kernel: tpu_custom_call.1
= control target key start
LH: loop header
LB: loop body
LE: loop exit
PB: predicated region body
PF: predicated region fallthrough
CT: control target
= control target key end

     0   :  { %12 = vsyncpa [#allocation3], 0  ;;  %s2248_s0 = inlined_call_operand.hbm [shape: f32[2,8,8,64], index: 0, kind: input, shape index: {}]   ;;  %s2249_s1 = inlined_call_operand.vmem [shape: bf16[64,16], index: 1, kind: input, shape index: {}]   ;;  %s2250_s2 = inlined_call_operand.vmem [shape: bf16[144,16], index: 2, kind: input, shape index: {}]   ;;  %s2251_s3 = inlined_call_operand.vmem [shape: bf16[16,64], index: 3, kind: input, shape index: {}]   ;;  %s2252_s4 = inlined_call_operand.vmem [shape: f32[1,16], index: 4, kind: input, shape index: {}]   ;;  %s2253_s5 = inlined_call_operand.vmem [shape: f32[1,16], index: 5, kind: input, shape index: {}]   ;;  %s2254_s6 = inlined_call_operand.vmem [shape: f32[1,64], index: 6, kind: input, shape index: {}]   ;;  %s2255_s7 = inlined_call_operand.hbm [shape: f32[2,8,8,64], index: 7, kind: output, shape index: {}]  }
   0x1   :  { %14 = vsyncpa [#allocation3 + $0x1], 0 }
   0x2   :  { %15 = vsyncpa [#allocation4], 0 }
   0x3   :  { %17 = vsyncpa [#allocation4 + $0x1], 0  ;;  %s1623_s24 = smov 0   ;;  %s1625_s25 = smov 0  }
   0x4   :  { %s1627_s26 = smov 0   ;;  %s1629_s27 = smov 0  }
   0x5 LB: > { %s1644_s28 = sadd.s32 4294967295, %s1567_s27   ;;  %s1286_s29 = sadd.s32 4294967294, %s1567_s27   ;;  %s1567_s27 = sphi %s1629_s27, %s2274_s27   ;;  %s1563_s26 = sphi %s1627_s26, %s2273_s26   ;;  %s1559_s25 = sphi %s1625_s25, %s2272_s25   ;;  %s1555_s24 = sphi %s1623_s24, %s2271_s24  }
   0x6   : > { %s1648_s30 = sadd.s32 1, %s1567_s27   ;;  %s30_s8 = sadd.s32 1, %s1563_s26 }
   0x7   : > { %s27_s9 = ssub.s32 %s1567_s27, %s1648_s30  ;;  %p37_p0 = scmp.ne.s32.totalorder %s1563_s26, %s1559_s25 }
   0x8   : > { %p28_p1 = scmp.eq.s32.totalorder %s27_s9, 0  ;;  %p38_p2 = scmp.eq.s32.totalorder %s1567_s27, 0 }
   0x9   : > { %p43_p3 = scmp.ne.s32.totalorder %s1559_s25, %s1555_s24  ;;  %p44_p4 = scmp.eq.s32.totalorder %s1644_s28, 0 }
   0xa   : > { %s1660_s10 = scalar_select %p28_p1, %s1563_s26, %s30_s8  }
   0xb   : > { %p1662_p5 = por %p38_p2, %p37_p0  ;;  %p1666_p6 = por %p44_p4, %p43_p3 }
   0xc   : > { %p193_p7 = scmp.eq.s32.totalorder %s1644_s28, 1  ;;  %p199_p8 = scmp.eq.s32.totalorder %s1286_s29, 1 }
   0xd   : > { %s2259_s12 = scalar_select %p1666_p6, 1, 0 }
   0xe   : > { %p1415_p10 = scmp.lt.s32.totalorder %s1567_s27, 2  ;;  %p1673_p11 = por %p193_p7, %p37_p0 }
   0xf   : > { %p1677_p12 = por %p199_p8, %p43_p3  ;;  %s237_s15 = sand.u32 1, %s1563_s26  }
  0x10   : > { %s2260_s13 = scalar_select %p1673_p11, 1, 0 }
  0x11   : > { %s2261_s14 = scalar_select %p1677_p12, 1, 0 }
  0x12   : > { %s1350_s16 = sshll.u32 %s1567_s27, 10  ;;  %s1289_s17 = sshll.u32 %s237_s15, 6 }
  0x13   : > { %s1686_s20 = scalar_lea.hbm %s2248_s0, %s1350_s16  ;;  %s241_s21 = scalar_lea.vmem [#allocation2], %s1289_s17 }
  0x14   : > { %s248_s22 = sshll.u32 %s241_s21, 4  ;;  %p1690_p13 = pnand %p1415_p10, %p1662_p5  ;;  %s1694_s22 = int_to_ptr.vmem [resolvable:$true] %s248_s22 }
  0x15   : > { %s1696_s29 = scalar_lea.sflag [#allocation3], %s237_s15  ;;  %s1475_s8 = scalar_lea.hbm %s1686_s20, 1024 }
  0x16   : > { %p1476_p0 = scmp.ne.s32.totalorder %s1686_s20, %s1475_s8  ;;  %p1477_p1 = pneg %p1690_p13 }
  0x17   : > { %s1480_s17 = scalar_lea.hbm %s2248_s0, 2048  ;;  %p1481_p4 = scmp.lt.s32.totalorder %s1686_s20, %s2248_s0 }
  0x18   : > { %p1478_p2 = pnand %p1477_p1, %p1476_p0  ;;  %p1482_p5 = scmp.lt.s32.totalorder %s1480_s17, %s1475_s8 }
  0x1a   : > { %p1479_p3 = pneg %p1478_p2  ;;  %p1483_p7 = por %p1482_p5, %p1481_p4 }
  0x1c   : > { %p1484_p8 = pnand %p1483_p7, %p1479_p3 }
  0x1e   : > { %1487 = shalt.err (!%p1484_p8)
}
  0x1f   : > { %s1488_s15 = scalar_lea.vmem %s1694_s22, 1024  ;;  %s1569_s19 = smov [#allocation2]  }
  0x20   : > { %p1489_p10 = scmp.ne.s32.totalorder %s1694_s22, %s1488_s15  ;;  %s1493_s21 = sshll.u32 %s1569_s19, 4  ;;  %s1494_s21 = int_to_ptr.vmem [resolvable:$false] %s1493_s21 }
  0x21   : > { %s1495_s9 = scalar_lea.vmem %s1494_s21, 2048  ;;  %p1496_p2 = scmp.lt.s32.totalorder %s1694_s22, %s1494_s21 }
  0x22   : > { %p1491_p9 = pnand %p1489_p10, %p1477_p1  ;;  %p1497_p12 = scmp.lt.s32.totalorder %s1495_s9, %s1488_s15 }
  0x24   : > { %p1492_p0 = pneg %p1491_p9  ;;  %p1498_p11 = por %p1497_p12, %p1496_p2 }
  0x26   : > { %p1499_p6 = pnand %p1498_p11, %p1492_p0 }
  0x28   : > { %1502 = shalt.err (!%p1499_p6)
}
  0x29   : > { %s1570_s8 = smov 128   ;;  %s1571_s16 = smov 8  }
  0x2a   : > { %1410 = dma.hbm_to_vmem [thread:$0]  (!%p1690_p13), %s1686_s20, 1024, %s1694_s22, %s1696_s29, %s1570_s8, %s1570_s8, %s1571_s16  }
  0x2b   : > { %p1292_p9 = scmp.ge.s32.totalorder %s1567_s27, 1  ;;  %p256_p1 = scmp.lt.s32.totalorder %s1567_s27, 3 }
  0x2d   : > { %p257_p3 = pnand %p1292_p9, %p256_p1 }
  0x2e   : > { %s1720_s17 = sand.u32 (!%p257_p3), 1, %s1559_s25   ;;  %p2263_p6 = scmp.ne.s32.totalorder (!%p257_p3), %s2259_s12, 0 }
  0x2f   : > { %260 = sbr.rel (%p257_p3) target bundleno = 913 (0x391), region = 48  ;;  %s1293_s11 = sshll.u32 (!%p257_p3), %s1720_s17, 6 }
  0x30   : > { %s263_s18 = scalar_lea.sflag (!%p257_p3), [#allocation3], %s1720_s17  ;;  %s266_s15 = scalar_lea.vmem (!%p257_p3), [#allocation2], %s1293_s11 }
  0x34   : > { %1546 = dma.done.wait (%p2263_p6), %s263_s18, 1024  }
  0x35   : > { %1548 = vsyncadd (%p2263_p6), %s263_s18, 4294966272  ;;  %v1461_v0 = vld [vmem:[%s2249_s1 + $0x18] sm:$0xff]   ;;  %v1462_v1 = vld [vmem:[%s2249_s1 + $0x10] sm:$0xff]   ;;  %vm373_vm0 = vcmask 523264   ;;  %v1572_v16 = vmov 0   ;;  %vm581_vm1 = vcmask 1043456  }
  0x36   : > { %1377 = vmatprep.subr.bf16.mxu0 %v1461_v0  ;;  %v1463_v2 = vld [vmem:[%s2249_s1 + $0x8] sm:$0xff]   ;;  %v1739_v3 = vld [vmem:[%s266_s15] sm:$0xff]  ;;  %v1749_v7 = vld [vmem:[%s266_s15 + $0x10] sm:$0xff]  ;;  %v557_v17 = vrot.slane %v1572_v16, 1  ;;  %vm582_vm2 = vsmask.f32 3328  ;;  %1006 = vmatprep.subr.bf16.mxu1 %v1572_v16 }
  0x37   : > { %1378 = vmatpush3.bf16.msra.mxu0 %v1461_v0  ;;  %v1741_v4 = vld [vmem:[%s266_s15 + $0x8] sm:$0xff]  ;;  %v1464_v6 = vld [vmem:[%s2249_s1] sm:$0xff]   ;;  %v1751_v8 = vld [vmem:[%s266_s15 + $0x18] sm:$0xff]  ;;  %s1573_s8 = smov 16   ;;  %s1574_s16 = smov 32   ;;  %vm546_vm4 = vcmask 1040384  }
  0x38   : > { %1379 = vmatprep.subr.bf16.mxu0 %v1462_v1  ;;  %v1351_v5 = vpack.c.bf16 %v1741_v4, %v1739_v3  ;;  %v1753_v9 = vld [vmem:[%s266_s15 + $0x20] sm:$0xff]  ;;  %v1755_v10 = vld [vmem:[%s266_s15 + $0x28] sm:$0xff]  ;;  %v1352_v11 = vpack.c.bf16 %v1751_v8, %v1749_v7  ;;  %v1763_v13 = vld [vmem:[%s266_s15 + $0x30] sm:$0xff]  ;;  %622 = vrot.lane.b32.xlu0 %v1572_v16, %s1573_s8  ;;  %s1575_s20 = smov 64   ;;  %s1576_s22 = smov 112   ;;  %vm752_vm7 = vcmask 130048  }
  0x39   : > { %v1353_v12 = vpack.c.bf16 %v1755_v10, %v1753_v9  ;;  %v1765_v14 = vld [vmem:[%s266_s15 + $0x38] sm:$0xff]  ;;  %vm1772_vm3 = vmand %vm581_vm1, %vm582_vm2  ;;  %v1784_v20 = vld [vmem:[%s2252_s4] ss:$0 sm:$0xff]  ;;  %vm547_vm5 = vsmask.f32 256  ;;  %s1577_s19 = smov 96  }
  0x3a   : > { %1385 = vmatprep.mubr.msk.bf16.mxu0 %vm373_vm0, %v1351_v5  ;;  %v1354_v15 = vpack.c.bf16 %v1765_v14, %v1763_v13  ;;  %v584_v19 = vsel %vm1772_vm3, %v557_v17, 0  ;;  %vm1820_vm6 = vmand %vm546_vm4, %vm547_vm5  ;;  %v1465_v60 = vld [vmem:[%s2250_s2 + $0x38] sm:$0xff]   ;;  %s1578_s29 = smov 48   ;;  %s1579_s9 = smov 80   ;;  %vm777_vm8 = vcmask 261120   ;;  %vm794_vm9 = vcmask 392192  }
  0x3b   : > { %1380 = vmatpush3.bf16.msra.mxu0 %v1462_v1  ;;  %646 = vrot.lane.b32.xlu1 %v584_v19, %s1574_s16  ;;  %vm827_vm10 = vcmask 654336   ;;  %vm844_vm11 = vcmask 785408   ;;  %vm861_vm12 = vcmask 916480   ;;  %p2268_p12 = scmp.ne.s32.totalorder %s2260_s13, 0 }
  0x3c   : > { %1381 = vmatprep.subr.bf16.mxu0 %v1463_v2  ;;  %1007 = vmatpush1.bf16.msra.mxu1 %v1465_v60 }
  0x3d   : > { %1008 = vmatprep.subr.bf16.mxu1 %v1572_v16 }
  0x3f   : > { %1382 = vmatpush3.bf16.msra.mxu0 %v1463_v2  ;;  %v1466_v2 = vld [vmem:[%s2250_s2 + $0x30] sm:$0xff]  }
  0x40   : > { %1383 = vmatprep.subr.bf16.mxu0 %v1464_v6  ;;  %1009 = vmatpush1.bf16.msra.mxu1 %v1466_v2 }
  0x41   : > { %1010 = vmatprep.subr.bf16.mxu1 %v1572_v16 }
  0x43   : > { %1384 = vmatpush3.bf16.msra.mxu0 %v1464_v6 }
  0x46   : > { %1386 = vmatmul.mubr.msk.bf16.vlgmr.msra.gmra.mxu0 %vm373_vm0, %v1352_v11 }
  0x47   : > { %1389 = vmatprep.mubr.msk.bf16.mxu0 %vm373_vm0, %v1353_v12 }
  0x4e   : > { %1390 = vmatmul.mubr.msk.bf16.gmra.mxu0 %vm373_vm0, %v1354_v15  ;;  %v1467_v15 = vld [vmem:[%s2250_s2 + $0x28] sm:$0xff]  }
  0x4f   : > { %1011 = vmatpush1.bf16.msra.mxu1 %v1467_v15 }
  0x50   : > { %1012 = vmatprep.subr.bf16.mxu1 %v1572_v16 }
 0x106   : > { %v1387_v21 = vpop.f32.mrf.mxu0 }
 0x107   : > { %v429_v22 = vadd.f32 %v1387_v21, %v1784_v20 }
 0x108   : > { %v420_v23 = vpop.f32.mrf.mxu0 }
 0x109   : > { %v453_v24 = vmax.f32 %v429_v22, 0.0  ;;  %v421_v25 = vadd.f32 %v1784_v20, %v420_v23  ;;  %v1468_v22 = vld [vmem:[%s2250_s2 + $0x20] sm:$0xff]  }
 0x10a   : > { %v1388_v26 = vpop.f32.mrf.mxu0  ;;  %1013 = vmatpush1.bf16.msra.mxu1 %v1468_v22  ;;  %v2012_v22 = vcombine.low %v1572_v16, %v1572_v16 }
 0x10b   : > { %v1357_v27 = vpack.c.bf16 %v453_v24, %v453_v24  ;;  %v451_v28 = vmax.f32 %v421_v25, 0.0  ;;  %v432_v29 = vadd.f32 %v1388_v26, %v1784_v20  ;;  %1014 = vmatprep.subr.bf16.mxu1 %v1572_v16 }
 0x10c   : > { %v423_v30 = vpop.f32.mrf.mxu0 }
 0x10d   : > { %v424_v31 = vadd.f32 %v1784_v20, %v423_v30  ;;  %690 = vrot.lane.b32.xlu0 %v1357_v27, %s1575_s20  ;;  %738 = vrot.lane.b32.xlu1 %v1357_v27, %s1576_s22  ;;  %v507_v33 = vshll.u32 %v1357_v27, 16  ;;  %v1792_v34 = vpack.c.bf16 %v451_v28, %v451_v28  ;;  %v454_v35 = vmax.f32 %v432_v29, 0.0 }
 0x10e   : > { %v1391_v32 = vpop.f32.mrf.mxu0  ;;  %v504_v38 = vshrl.u32 %v1357_v27, 16 }
 0x10f   : > { %v452_v36 = vmax.f32 %v424_v31, 0.0  ;;  %v563_v41 = vrot.slane %v507_v33, 1  ;;  %v1801_v42 = vpack.c.bf16 %v454_v35, %v454_v35  ;;  %v445_v57 = vadd.f32 %v1391_v32, %v1784_v20  ;;  %v1470_v31 = vld [vmem:[%s2250_s2 + $0x10] sm:$0xff]   ;;  %v1471_v35 = vld [vmem:[%s2250_s2 + $0x8] sm:$0xff]  }
 0x110   : > { %v436_v37 = vpop.f32.mrf.mxu0  ;;  %v506_v45 = vrot.slane %v504_v38, 7  ;;  %v493_v1 = vshll.u32 %v1792_v34, 16  ;;  %v490_v17 = vshrl.u32 %v1792_v34, 16 }
 0x111   : > { %v1794_v39 = vpack.c.bf16 %v452_v36, %v452_v36  ;;  %628 = vrot.lane.b32.xlu1 %v1357_v27, %s1573_s8  ;;  %624 = vrot.lane.b32.xlu0 %v1792_v34, %s1573_s8  ;;  %v564_v49 = vor.u32 %v563_v41, %v504_v38  ;;  %v457_v62 = vmax.f32 %v445_v57, 0.0  ;;  %v437_v19 = vadd.f32 %v1784_v20, %v436_v37  ;;  %v1469_v27 = vld [vmem:[%s2250_s2 + $0x18] sm:$0xff]  }
 0x112   : > { %v1799_v40 = vpop.f32.mrf.mxu0  ;;  %v509_v52 = vor.u32 %v507_v33, %v506_v45  ;;  %v559_v12 = vrot.slane %v493_v1, 1  ;;  %v511_v25 = vshrl.u32 %v1801_v42, 16  ;;  %v492_v26 = vrot.slane %v490_v17, 7  ;;  %1015 = vmatpush1.bf16.msra.mxu1 %v1469_v27  ;;  %v1473_v45 = vld [vmem:[%s2250_s2 + $0x40] sm:$0xff]  }
 0x113   : > { %v500_v44 = vshll.u32 %v1794_v39, 16  ;;  %v497_v47 = vshrl.u32 %v1794_v39, 16  ;;  %v587_v56 = vsel %vm1772_vm3, %v564_v49, 0  ;;  %v1858_v6 = vpack.c.bf16 %v457_v62, %v457_v62  ;;  %1016 = vmatprep.subr.bf16.mxu1 %v1572_v16 }
 0x114   : > { %v439_v43 = vpop.f32.mrf.mxu0  ;;  %v1834_v59 = vsel %vm1820_vm6, 0, %v509_v52  ;;  %v560_v21 = vor.u32 %v559_v12, %v490_v17  ;;  %v455_v23 = vmax.f32 %v437_v19, 0.0  ;;  %v513_v29 = vrot.slane %v511_v25, 7 }
 0x115   : > { %692 = vrot.lane.b32.xlu1 %v1801_v42, %s1575_s20  ;;  %686 = vrot.lane.b32.xlu0 %v1792_v34, %s1575_s20  ;;  %v440_v46 = vadd.f32 %v1784_v20, %v439_v43  ;;  %v561_v48 = vrot.slane %v500_v44, 1  ;;  %v514_v30 = vshll.u32 %v1801_v42, 16  ;;  %v495_v32 = vor.u32 %v493_v1, %v492_v26 }
 0x116   : > { %v585_v24 = vsel %vm1772_vm3, %v560_v21, 0  ;;  %v1891_v28 = vpack.c.bf16 %v455_v23, %v455_v23  ;;  %1017 = vmatpush1.bf16.msra.mxu1 %v1470_v31  ;;  %v448_v37 = vadd.f32 %v1799_v40, %v1784_v20  ;;  %v499_v40 = vrot.slane %v497_v47, 7  ;;  %v647_v31 = vpop.permute.xlu1 %646 }
 0x117   : > { %v456_v50 = vmax.f32 %v440_v46, 0.0  ;;  %v562_v51 = vor.u32 %v561_v48, %v497_v47  ;;  %v516_v33 = vor.u32 %v514_v30, %v513_v29  ;;  %v565_v34 = vrot.slane %v514_v30, 1  ;;  %1018 = vmatprep.subr.bf16.mxu1 %v1572_v16  ;;  %v623_v30 = vpop.permute.xlu0 %622 }
 0x118   : > { %v1910_v36 = vsel %vm1820_vm6, 0, %v495_v32  ;;  %v458_v43 = vmax.f32 %v448_v37, 0.0  ;;  %v502_v48 = vor.u32 %v500_v44, %v499_v40  ;;  %v532_v49 = vshrl.u32 %v1858_v6, 16 }
 0x119   : > { %688 = vrot.lane.b32.xlu1 %v1794_v39, %s1575_s20  ;;  %740 = vrot.lane.b32.xlu0 %v1801_v42, %s1576_s22  ;;  %v1818_v53 = vpack.c.bf16 %v456_v50, %v456_v50  ;;  %v1826_v55 = vsel %vm1772_vm3, %v562_v51, 0  ;;  %v1918_v38 = vsel %vm1820_vm6, 0, %v516_v33  ;;  %v566_v41 = vor.u32 %v565_v34, %v511_v25 }
 0x11a   : > { %v1319_v58 = vcombine.low %v1826_v55, %v587_v56  ;;  %1019 = vmatpush1.bf16.msra.mxu1 %v1471_v35  ;;  %v1941_v46 = vpack.c.bf16 %v458_v43, %v458_v43  ;;  %v1951_v47 = vsel %vm1820_vm6, 0, %v502_v48  ;;  %v535_v44 = vshll.u32 %v1858_v6, 16 }
 0x11b   : > { %v525_v61 = vshrl.u32 %v1818_v53, 16  ;;  %v528_v0 = vshll.u32 %v1818_v53, 16  ;;  %1020 = vmatprep.subr.bf16.mxu1 %v1572_v16  ;;  %v1929_v20 = vsel %vm1772_vm3, %v566_v41, 0  ;;  %v518_v52 = vshrl.u32 %v1891_v28, 16 }
 0x11c   : > { %1335 = vmatprep.mubr.msk.bf16.mxu1 %vm752_vm7, %v1319_v58  ;;  %v571_v51 = vrot.slane %v535_v44, 1  ;;  %v521_v60 = vshll.u32 %v1891_v28, 16  ;;  %v594_v1 = vshrl.u32 %v1941_v46, 16  ;;  %v597_v12 = vshll.u32 %v1941_v46, 16 }
 0x11d   : > { %722 = vrot.lane.b32.xlu1 %v1834_v59, %s1577_s19  ;;  %630 = vrot.lane.b32.xlu0 %v1801_v42, %s1573_s8  ;;  %v527_v63 = vrot.slane %v525_v61, 7  ;;  %v1472_v42 = vld [vmem:[%s2250_s2] sm:$0xff]   ;;  %v520_v58 = vrot.slane %v518_v52, 7  ;;  %v569_v21 = vrot.slane %v528_v0, 1  ;;  %v610_v25 = vshrl.u32 %v2012_v22, 16 }
 0x11e   : > { %1021 = vmatpush1.bf16.msra.mxu1 %v1472_v42  ;;  %v572_v57 = vor.u32 %v571_v51, %v532_v49 }
 0x11f   : > { %v530_v5 = vor.u32 %v528_v0, %v527_v63  ;;  %1036 = vmatprep.subr.bf16.mxu1 %v1572_v16  ;;  %v567_v63 = vrot.slane %v521_v60, 1  ;;  %v570_v23 = vor.u32 %v569_v21, %v525_v61  ;;  %v612_v0 = vrot.slane %v610_v25, 7 }
 0x120   : > { %v1979_v62 = vsel %vm1772_vm3, %v572_v57, 0 }
 0x121   : > { %652 = vrot.lane.b32.xlu1 %v587_v56, %s1574_s16  ;;  %736 = vrot.lane.b32.xlu0 %v1794_v39, %s1576_s22  ;;  %v1862_v11 = vsel %vm1820_vm6, 0, %v530_v5  ;;  %v568_v5 = vor.u32 %v567_v63, %v518_v52  ;;  %v2025_v26 = vsel %vm1772_vm3, %v570_v23, 0 }
 0x122   : > { %1037 = vmatpush2.bf16.msra.mxu1 %v1473_v45 }
 0x123   : > { %v1997_v15 = vsel %vm1772_vm3, %v568_v5, 0 }
 0x125   : > { %746 = vrot.lane.b32.xlu1 %v1858_v6, %s1576_s22  ;;  %626 = vrot.lane.b32.xlu0 %v1794_v39, %s1573_s8  ;;  %v534_v39 = vrot.slane %v532_v49, 7 }
 0x127   : > { %v537_v50 = vor.u32 %v535_v44, %v534_v39 }
 0x129   : > { %636 = vrot.lane.b32.xlu1 %v1858_v6, %s1573_s8  ;;  %674 = vrot.lane.b32.xlu0 %v1834_v59, %s1578_s29 }
 0x12d   : > { %648 = vrot.lane.b32.xlu1 %v585_v24, %s1574_s16  ;;  %707 = vrot.lane.b32.xlu0 %v587_v56, %s1579_s9  ;;  %v1970_v56 = vsel %vm1820_vm6, 0, %v537_v50 }
 0x131   : > { %742 = vrot.lane.b32.xlu1 %v1891_v28, %s1576_s22  ;;  %698 = vrot.lane.b32.xlu0 %v1858_v6, %s1575_s20  ;;  %v596_v6 = vrot.slane %v594_v1, 7 }
 0x133   : > { %v599_v17 = vor.u32 %v597_v12, %v596_v6 }
 0x135   : > { %632 = vrot.lane.b32.xlu1 %v1891_v28, %s1573_s8  ;;  %670 = vrot.lane.b32.xlu0 %v1910_v36, %s1578_s29  ;;  %v601_v19 = vsel %vm1820_vm6, 0, %v599_v17  ;;  %v485_v17 = vrot.slane %v1572_v16, 7 }
 0x139   : > { %676 = vrot.lane.b32.xlu1 %v1918_v38, %s1578_s29  ;;  %703 = vrot.lane.b32.xlu0 %v585_v24, %s1579_s9  ;;  %v602_v24 = vrot.slane %v597_v12, 1 }
 0x13b   : > { %v603_v27 = vor.u32 %v602_v24, %v594_v1  ;;  %v549_v24 = vsel %vm1820_vm6, 0, %v485_v17 }
 0x13d   : > { %709 = vrot.lane.b32.xlu1 %v1929_v20, %s1579_s9  ;;  %694 = vrot.lane.b32.xlu0 %v1891_v28, %s1575_s20  ;;  %v2036_v28 = vsel %vm1772_vm3, %v603_v27, 0 }
 0x141   : > { %700 = vrot.lane.b32.xlu1 %v1941_v46, %s1575_s20  ;;  %724 = vrot.lane.b32.xlu0 %v1918_v38, %s1577_s19 }
 0x145   : > { %672 = vrot.lane.b32.xlu1 %v1951_v47, %s1578_s29  ;;  %654 = vrot.lane.b32.xlu0 %v1929_v20, %s1574_s16 }
 0x149   : > { %705 = vrot.lane.b32.xlu1 %v1826_v55, %s1579_s9  ;;  %720 = vrot.lane.b32.xlu0 %v1951_v47, %s1577_s19 }
 0x14d   : > { %696 = vrot.lane.b32.xlu1 %v1818_v53, %s1575_s20  ;;  %650 = vrot.lane.b32.xlu0 %v1826_v55, %s1574_s16  ;;  %v523_v55 = vor.u32 %v521_v60, %v520_v58 }
 0x14f   : > { %v1988_v2 = vsel %vm1820_vm6, 0, %v523_v55 }
 0x151   : > { %730 = vrot.lane.b32.xlu1 %v1970_v56, %s1577_s19  ;;  %744 = vrot.lane.b32.xlu0 %v1818_v53, %s1576_s22 }
 0x155   : > { %660 = vrot.lane.b32.xlu1 %v1979_v62, %s1574_s16  ;;  %634 = vrot.lane.b32.xlu0 %v1818_v53, %s1573_s8  ;;  %v613_v53 = vshll.u32 %v2012_v22, 16  ;;  %s1580_s8 = smov [#allocation5]  }
 0x157   : > { %v615_v61 = vor.u32 %v613_v53, %v612_v0 }
 0x159   : > { %726 = vrot.lane.b32.xlu1 %v1988_v2, %s1577_s19  ;;  %682 = vrot.lane.b32.xlu0 %v1970_v56, %s1578_s29  ;;  %v617_v29 = vsel %vm1820_vm6, 0, %v615_v61 }
 0x15d   : > { %656 = vrot.lane.b32.xlu1 %v1997_v15, %s1574_s16  ;;  %715 = vrot.lane.b32.xlu0 %v1979_v62, %s1579_s9 }
 0x161   : > { %684 = vrot.lane.b32.xlu1 %v601_v19, %s1578_s29  ;;  %678 = vrot.lane.b32.xlu0 %v1988_v2, %s1578_s29 }
 0x165   : > { %680 = vrot.lane.b32.xlu1 %v1862_v11, %s1578_s29  ;;  %711 = vrot.lane.b32.xlu0 %v1997_v15, %s1579_s9 }
 0x169   : > { %713 = vrot.lane.b32.xlu1 %v2025_v26, %s1579_s9  ;;  %728 = vrot.lane.b32.xlu0 %v1862_v11, %s1577_s19 }
 0x16d   : > { %717 = vrot.lane.b32.xlu1 %v2036_v28, %s1579_s9  ;;  %658 = vrot.lane.b32.xlu0 %v2025_v26, %s1574_s16  ;;  %s2174_s9 = scalar_lea.vmem [#allocation5], %s1293_s11  ;;  %s1363_s11 = sshll.u32 %s1644_s28, 10 }
 0x16e   : > { %s1213_s21 = sshll.u32 %s2174_s9, 4  ;;  %s2199_s15 = scalar_lea.hbm %s2255_s7, %s1363_s11  ;;  %s2201_s21 = int_to_ptr.vmem [resolvable:$true] %s1213_s21 }
 0x16f   : > { %s1200_s28 = scalar_lea.sflag [#allocation4], %s1720_s17  ;;  %s1503_s23 = scalar_lea.vmem %s2201_s21, 1024 }
 0x170   : > { %p1504_p11 = scmp.ne.s32.totalorder %s2201_s21, %s1503_s23  ;;  %s1507_s16 = sshll.u32 %s1580_s8, 4  ;;  %s1508_s16 = int_to_ptr.vmem [resolvable:$false] %s1507_s16 }
 0x171   : > { %734 = vrot.lane.b32.xlu1 %v617_v29, %s1577_s19  ;;  %732 = vrot.lane.b32.xlu0 %v601_v19, %s1577_s19  ;;  %s1509_s20 = scalar_lea.vmem %s1508_s16, 2048  ;;  %p1510_p5 = scmp.lt.s32.totalorder %s2201_s21, %s1508_s16 }
 0x172   : > { %p1505_p13 = pnand %p1504_p11, %p2268_p12  ;;  %p1511_p7 = scmp.lt.s32.totalorder %s1509_s20, %s1503_s23 }
 0x174   : > { %p1506_p4 = pneg %p1505_p13  ;;  %p1512_p8 = por %p1511_p7, %p1510_p5 }
 0x175   : > { %750 = vrot.lane.b32.xlu1 %v2012_v22, %s1576_s22  ;;  %748 = vrot.lane.b32.xlu0 %v1941_v46, %s1576_s22 }
 0x176   : > { %p1513_p10 = pnand %p1512_p8, %p1506_p4 }
 0x17f   : > { %v2050_v32 = vpop.permute.xlu0 %690  ;;  %v739_v33 = vpop.permute.xlu1 %738 }
 0x183   : > { %v629_v34 = vpop.permute.xlu1 %628  ;;  %v625_v35 = vpop.permute.xlu0 %624 }
 0x184   : > { %v764_v63 = vsel %vm752_vm7, %v1834_v59, %v629_v34  ;;  %v755_v59 = vsel %vm752_vm7, %v549_v24, %v623_v30  ;;  %v758_v61 = vsel %vm752_vm7, %v1910_v36, %v625_v35 }
 0x185   : > { %v779_v29 = vsel %vm777_vm8, %v755_v59, %v647_v31 }
 0x187   : > { %v693_v37 = vpop.permute.xlu1 %692  ;;  %v687_v41 = vpop.permute.xlu0 %686 }
 0x18b   : > { %v689_v42 = vpop.permute.xlu1 %688  ;;  %v2052_v43 = vpop.permute.xlu0 %740 }
 0x18f   : > { %v723_v40 = vpop.permute.xlu1 %722  ;;  %v2054_v45 = vpop.permute.xlu0 %630 }
 0x193   : > { %v653_v48 = vpop.permute.xlu1 %652  ;;  %v737_v49 = vpop.permute.xlu0 %736 }
 0x194   : > { %v785_v1 = vsel %vm777_vm8, %v764_v63, %v653_v48 }
 0x197   : > { %v2056_v39 = vpop.permute.xlu1 %746  ;;  %v627_v46 = vpop.permute.xlu0 %626 }
 0x19b   : > { %v2058_v44 = vpop.permute.xlu1 %636  ;;  %v675_v50 = vpop.permute.xlu0 %674 }
 0x19f   : > { %v649_v51 = vpop.permute.xlu1 %648  ;;  %v708_v52 = vpop.permute.xlu0 %707 }
 0x1a0   : > { %v781_v16 = vsel %vm777_vm8, %v758_v61, %v649_v51 }
 0x1a3   : > { %v743_v57 = vpop.permute.xlu1 %742  ;;  %v2060_v58 = vpop.permute.xlu0 %698 }
 0x1a7   : > { %v2062_v60 = vpop.permute.xlu1 %632  ;;  %v671_v55 = vpop.permute.xlu0 %670 }
 0x1ab   : > { %v677_v5 = vpop.permute.xlu1 %676  ;;  %v704_v12 = vpop.permute.xlu0 %703 }
 0x1ac   : > { %v802_v6 = vsel %vm794_vm9, %v785_v1, %v677_v5 }
 0x1ad   : > { %v818_v19 = vsel %vm373_vm0, %v802_v6, %v693_v37  ;;  %v796_v37 = vsel %vm794_vm9, %v779_v29, %v671_v55 }
 0x1ae   : > { %v812_v54 = vsel %vm373_vm0, %v796_v37, %v687_v41  ;;  %v1321_v41 = vcombine.low %v1929_v20, %v1997_v15 }
 0x1af   : > { %v710_v21 = vpop.permute.xlu1 %709  ;;  %v2070_v23 = vpop.permute.xlu0 %694  ;;  %v829_v36 = vsel %vm827_vm10, %v812_v54, %v704_v12 }
 0x1b3   : > { %v2074_v0 = vpop.permute.xlu1 %700  ;;  %v725_v27 = vpop.permute.xlu0 %724 }
 0x1b7   : > { %v673_v34 = vpop.permute.xlu1 %672  ;;  %v655_v63 = vpop.permute.xlu0 %654 }
 0x1b8   : > { %v798_v48 = vsel %vm794_vm9, %v781_v16, %v673_v34  ;;  %v835_v16 = vsel %vm827_vm10, %v818_v19, %v710_v21  ;;  %v618_v19 = vrot.slane %v613_v53, 1  ;;  %v767_v21 = vsel %vm752_vm7, %v1918_v38, %v2054_v45 }
 0x1b9   : > { %v814_v30 = vsel %vm373_vm0, %v798_v48, %v689_v42  ;;  %v761_v42 = vsel %vm752_vm7, %v1951_v47, %v627_v46 }
 0x1ba   : > { %v619_v53 = vor.u32 %v618_v19, %v610_v25 }
 0x1bb   : > { %v706_v1 = vpop.permute.xlu1 %705  ;;  %v721_v35 = vpop.permute.xlu0 %720 }
 0x1bc   : > { %v831_v31 = vsel %vm827_vm10, %v814_v30, %v706_v1  ;;  %v846_v55 = vsel %vm844_vm11, %v829_v36, %v721_v35 }
 0x1bd   : > { %v848_v51 = vsel %vm844_vm11, %v831_v31, %v723_v40  ;;  %v863_v5 = vsel %vm861_vm12, %v846_v55, %v737_v49  ;;  %v621_v55 = vsel %vm1772_vm3, %v619_v53, 0 }
 0x1be   : > { %v865_v6 = vsel %vm861_vm12, %v848_v51, %v739_v33 }
 0x1bf   : > { %v697_v17 = vpop.permute.xlu1 %696  ;;  %v1318_v24 = vcombine.low %v863_v5, %v865_v6  ;;  %v651_v12 = vpop.permute.xlu0 %650 }
 0x1c0   : > { %v783_v59 = vsel %vm777_vm8, %v761_v42, %v651_v12 }
 0x1c1   : > { %1039 = vmatmul.mubr.bf16.vlgmr.msra.gmra.mxu1 %v1318_v24  ;;  %v800_v40 = vsel %vm794_vm9, %v783_v59, %v675_v50  ;;  %v1325_v24 = vcombine.low %v2036_v28, %v621_v55 }
 0x1c2   : > { %1336 = vmatprep.mubr.msk.bf16.mxu1 %vm752_vm7, %v1321_v41  ;;  %v816_v49 = vsel %vm373_vm0, %v800_v40, %v2050_v32  ;;  %v776_v41 = vsel %vm752_vm7, %v1970_v56, %v2058_v44 }
 0x1c3   : > { %v731_v33 = vpop.permute.xlu1 %730  ;;  %v833_v61 = vsel %vm827_vm10, %v816_v49, %v708_v52  ;;  %v745_v29 = vpop.permute.xlu0 %744  ;;  %v1323_v52 = vcombine.low %v2025_v26, %v1979_v62  ;;  %v787_v62 = vsel %vm777_vm8, %v767_v21, %v655_v63 }
 0x1c4   : > { %v850_v20 = vsel %vm844_vm11, %v833_v61, %v725_v27 }
 0x1c5   : > { %v867_v47 = vsel %vm861_vm12, %v850_v20, %v2052_v43 }
 0x1c7   : > { %v661_v15 = vpop.permute.xlu1 %660  ;;  %v635_v46 = vpop.permute.xlu0 %634 }
 0x1c8   : > { %v773_v18 = vsel %vm752_vm7, %v1862_v11, %v635_v46  ;;  %v793_v12 = vsel %vm777_vm8, %v776_v41, %v661_v15 }
 0x1cb   : > { %v727_v34 = vpop.permute.xlu1 %726  ;;  %v683_v37 = vpop.permute.xlu0 %682 }
 0x1cc   : > { %v852_v50 = vsel %vm844_vm11, %v835_v16, %v727_v34 }
 0x1cd   : > { %v869_v48 = vsel %vm861_vm12, %v852_v50, %v743_v57  ;;  %v770_v57 = vsel %vm752_vm7, %v1988_v2, %v2062_v60 }
 0x1ce   : > { %v1320_v32 = vcombine.low %v867_v47, %v869_v48 }
 0x1cf   : > { %v657_v54 = vpop.permute.xlu1 %656  ;;  %v716_v1 = vpop.permute.xlu0 %715 }
 0x1d0   : > { %1047 = vmatmul.mubr.bf16.gmra.mxu1 %v1320_v32  ;;  %v789_v26 = vsel %vm777_vm8, %v770_v57, %v657_v54 }
 0x1d1   : > { %1337 = vmatprep.mubr.msk.bf16.mxu1 %vm752_vm7, %v1323_v52 }
 0x1d3   : > { %v685_v43 = vpop.permute.xlu1 %684  ;;  %v679_v27 = vpop.permute.xlu0 %678 }
 0x1d4   : > { %v804_v36 = vsel %vm794_vm9, %v787_v62, %v679_v27  ;;  %v810_v40 = vsel %vm794_vm9, %v793_v12, %v685_v43 }
 0x1d5   : > { %v820_v38 = vsel %vm373_vm0, %v804_v36, %v2070_v23  ;;  %v826_v11 = vsel %vm373_vm0, %v810_v40, %v2074_v0  ;;  %v1317_v0 = vld [vmem:[%s2253_s5] ss:$0 sm:$0xff] }
 0x1d7   : > { %v681_v30 = vpop.permute.xlu1 %680  ;;  %v712_v35 = vpop.permute.xlu0 %711 }
 0x1d8   : > { %v806_v31 = vsel %vm794_vm9, %v789_v26, %v681_v30  ;;  %v837_v2 = vsel %vm827_vm10, %v820_v38, %v712_v35 }
 0x1d9   : > { %v822_v45 = vsel %vm373_vm0, %v806_v31, %v697_v17 }
 0x1db   : > { %v714_v51 = vpop.permute.xlu1 %713  ;;  %v729_v63 = vpop.permute.xlu0 %728 }
 0x1dc   : > { %v839_v60 = vsel %vm827_vm10, %v822_v45, %v714_v51  ;;  %v854_v6 = vsel %vm844_vm11, %v837_v2, %v729_v63 }
 0x1dd   : > { %v856_v5 = vsel %vm844_vm11, %v839_v60, %v731_v33  ;;  %v871_v22 = vsel %vm861_vm12, %v854_v6, %v745_v29 }
 0x1de   : > { %v873_v25 = vsel %vm861_vm12, %v856_v5, %v2056_v39 }
 0x1df   : > { %v718_v23 = vpop.permute.xlu1 %717  ;;  %v1322_v17 = vcombine.low %v871_v22, %v873_v25  ;;  %v659_v42 = vpop.permute.xlu0 %658 }
 0x1e0   : > { %v791_v59 = vsel %vm777_vm8, %v773_v18, %v659_v42  ;;  %v843_v33 = vsel %vm827_vm10, %v826_v11, %v718_v23  ;;  %v1339_v42 = vld [vmem:[%s2254_s6] ss:$0 sm:$0xff] }
 0x1e1   : > { %1055 = vmatmul.mubr.bf16.gmra.mxu1 %v1322_v17  ;;  %v808_v39 = vsel %vm794_vm9, %v791_v59, %v683_v37 }
 0x1e2   : > { %1338 = vmatprep.mubr.msk.bf16.mxu1 %vm752_vm7, %v1325_v24  ;;  %v824_v49 = vsel %vm373_vm0, %v808_v39, %v2060_v58  ;;  %v1474_v58 = vld [vmem:[%s2251_s3] sm:$0xff]  }
 0x1e3   : > { %v735_v28 = vpop.permute.xlu1 %734  ;;  %v733_v56 = vpop.permute.xlu0 %732  ;;  %v841_v44 = vsel %vm827_vm10, %v824_v49, %v716_v1  ;;  %1393 = vmatprep.subr.bf16.mxu0 %v1474_v58 }
 0x1e4   : > { %v860_v61 = vsel %vm844_vm11, %v843_v33, %v735_v28  ;;  %v858_v20 = vsel %vm844_vm11, %v841_v44, %v733_v56  ;;  %1394 = vmatpush3.bf16.msra.mxu0 %v1474_v58 }
 0x1e7   : > { %v751_v29 = vpop.permute.xlu1 %750  ;;  %v749_v15 = vpop.permute.xlu0 %748 }
 0x1e8   : > { %v877_v47 = vsel %vm861_vm12, %v860_v61, %v751_v29  ;;  %v875_v46 = vsel %vm861_vm12, %v858_v20, %v749_v15 }
 0x1e9   : > { %v1324_v16 = vcombine.low %v875_v46, %v877_v47 }
 0x1eb   : > { %1063 = vmatmul.mubr.bf16.gmra.mxu1 %v1324_v16 }
 0x281   : > { %v1040_v34 = vpop.f32.mrf.mxu1 }
 0x282   : > { %v1041_v37 = vadd.f32 %v1317_v0, %v1040_v34 }
 0x283   : > { %v1042_v50 = vpop.f32.mrf.mxu1 }
 0x284   : > { %v1071_v54 = vmax.f32 %v1041_v37, 0.0 }
 0x285   : > { %v1043_v48 = vpop.f32.mrf.mxu1 }
 0x286   : > { %v1044_v32 = vadd.f32 %v1317_v0, %v1043_v48 }
 0x287   : > { %v1045_v52 = vpop.f32.mrf.mxu1 }
 0x288   : > { %v1072_v1 = vmax.f32 %v1044_v32, 0.0 }
 0x28a   : > { %v1079_v43 = vpack.c.bf16 %v1072_v1, %v1071_v54 }
 0x28c   : > { %1395 = vmatprep.mubr.msk.bf16.mxu0 %vm752_vm7, %v1079_v43 }
 0x290   : > { %v1048_v27 = vpop.f32.mrf.mxu1 }
 0x291   : > { %v1049_v21 = vadd.f32 %v1317_v0, %v1048_v27 }
 0x292   : > { %v1050_v19 = vpop.f32.mrf.mxu1 }
 0x293   : > { %v1073_v30 = vmax.f32 %v1049_v21, 0.0 }
 0x294   : > { %v1051_v57 = vpop.f32.mrf.mxu1 }
 0x295   : > { %v1052_v62 = vadd.f32 %v1317_v0, %v1051_v57 }
 0x296   : > { %v1053_v26 = vpop.f32.mrf.mxu1 }
 0x297   : > { %v1074_v36 = vmax.f32 %v1052_v62, 0.0 }
 0x299   : > { %v1080_v31 = vpack.c.bf16 %v1074_v36, %v1073_v30 }
 0x29b   : > { %1396 = vmatmul.mubr.msk.bf16.vlgmr.msra.gmra.mxu0 %vm752_vm7, %v1080_v31 }
 0x2a1   : > { %v1056_v35 = vpop.f32.mrf.mxu1 }
 0x2a2   : > { %v1057_v38 = vadd.f32 %v1317_v0, %v1056_v35 }
 0x2a3   : > { %v1058_v53 = vpop.f32.mrf.mxu1 }
 0x2a4   : > { %v1075_v60 = vmax.f32 %v1057_v38, 0.0 }
 0x2a5   : > { %v1059_v45 = vpop.f32.mrf.mxu1 }
 0x2a6   : > { %v1060_v51 = vadd.f32 %v1317_v0, %v1059_v45 }
 0x2a7   : > { %v1061_v2 = vpop.f32.mrf.mxu1 }
 0x2a8   : > { %v1076_v63 = vmax.f32 %v1060_v51, 0.0 }
 0x2aa   : > { %v1081_v55 = vpack.c.bf16 %v1076_v63, %v1075_v60 }
 0x2ab   : > { %v1064_v5 = vpop.f32.mrf.mxu1 }
 0x2ac   : > { %1399 = vmatprep.mubr.msk.bf16.mxu0 %vm752_vm7, %v1081_v55  ;;  %v1065_v22 = vadd.f32 %v1317_v0, %v1064_v5 }
 0x2ad   : > { %v1066_v6 = vpop.f32.mrf.mxu1 }
 0x2ae   : > { %v1077_v24 = vmax.f32 %v1065_v22, 0.0 }
 0x2af   : > { %v1067_v25 = vpop.f32.mrf.mxu1 }
 0x2b0   : > { %v1068_v23 = vadd.f32 %v1317_v0, %v1067_v25 }
 0x2b1   : > { %v1069_v17 = vpop.f32.mrf.mxu1 }
 0x2b2   : > { %v1078_v41 = vmax.f32 %v1068_v23, 0.0 }
 0x2b4   : > { %v1082_v18 = vpack.c.bf16 %v1078_v41, %v1077_v24 }
 0x2b6   : > { %1400 = vmatmul.mubr.msk.bf16.gmra.mxu0 %vm752_vm7, %v1082_v18 }
 0x35b   : > { %v1397_v12 = vpop.f32.mrf.mxu0 }
 0x35c   : > { %v1153_v59 = vadd.f32 %v1397_v12, %v1339_v42 }
 0x35d   : > { %v1144_v40 = vpop.f32.mrf.mxu0 }
 0x35e   : > { %v1177_v39 = vadd.f32 %v1153_v59, %v1749_v7  ;;  %v1145_v28 = vadd.f32 %v1339_v42, %v1144_v40 }
 0x35f   : > { %v1398_v49 = vpop.f32.mrf.mxu0 }
 0x360   : > { %v1185_v56 = vmax.f32 %v1177_v39, 0.0  ;;  %v1175_v11 = vadd.f32 %v1145_v28, %v1739_v3  ;;  %v1156_v44 = vadd.f32 %v1398_v49, %v1339_v42 }
 0x361   : > { %v1147_v33 = vpop.f32.mrf.mxu0 }
 0x362   : > { %1193 = vst.msk [vmem:[%s2174_s9 + $0x10] sm:$0xff] %vm373_vm0, %v1185_v56  ;;  %v1183_v61 = vmax.f32 %v1175_v11, 0.0  ;;  %v1178_v29 = vadd.f32 %v1156_v44, %v1751_v8  ;;  %v1148_v7 = vadd.f32 %v1339_v42, %v1147_v33 }
 0x364   : > { %1191 = vst.msk [vmem:[%s2174_s9] sm:$0xff] %vm373_vm0, %v1183_v61  ;;  %v1186_v20 = vmax.f32 %v1178_v29, 0.0  ;;  %v1176_v3 = vadd.f32 %v1148_v7, %v1741_v4 }
 0x366   : > { %1194 = vst.msk [vmem:[%s2174_s9 + $0x18] sm:$0xff] %vm373_vm0, %v1186_v20  ;;  %v1184_v47 = vmax.f32 %v1176_v3, 0.0 }
 0x368   : > { %1192 = vst.msk [vmem:[%s2174_s9 + $0x8] sm:$0xff] %vm373_vm0, %v1184_v47 }
 0x376   : > { %v1401_v15 = vpop.f32.mrf.mxu0 }
 0x377   : > { %v1169_v46 = vadd.f32 %v1401_v15, %v1339_v42 }
 0x378   : > { %v1160_v16 = vpop.f32.mrf.mxu0 }
 0x379   : > { %v1181_v8 = vadd.f32 %v1169_v46, %v1763_v13  ;;  %v1161_v58 = vadd.f32 %v1339_v42, %v1160_v16 }
 0x37a   : > { %v1402_v0 = vpop.f32.mrf.mxu0 }
 0x37b   : > { %v1189_v34 = vmax.f32 %v1181_v8, 0.0  ;;  %v1179_v50 = vadd.f32 %v1161_v58, %v1753_v9  ;;  %v1172_v4 = vadd.f32 %v1402_v0, %v1339_v42 }
 0x37c   : > { %v1163_v37 = vpop.f32.mrf.mxu0 }
 0x37d   : > { %1197 = vst.msk [vmem:[%s2174_s9 + $0x30] sm:$0xff] %vm373_vm0, %v1189_v34  ;;  %v1187_v48 = vmax.f32 %v1179_v50, 0.0  ;;  %v1182_v32 = vadd.f32 %v1172_v4, %v1765_v14  ;;  %v1164_v52 = vadd.f32 %v1339_v42, %v1163_v37 }
 0x37f   : > { %1195 = vst.msk [vmem:[%s2174_s9 + $0x20] sm:$0xff] %vm373_vm0, %v1187_v48  ;;  %v1190_v13 = vmax.f32 %v1182_v32, 0.0  ;;  %v1180_v54 = vadd.f32 %v1164_v52, %v1755_v10 }
 0x381   : > { %1198 = vst.msk [vmem:[%s2174_s9 + $0x38] sm:$0xff] %vm373_vm0, %v1190_v13  ;;  %v1188_v9 = vmax.f32 %v1180_v54, 0.0 }
 0x383   : > { %1196 = vst.msk [vmem:[%s2174_s9 + $0x28] sm:$0xff] %vm373_vm0, %v1188_v9 }
 0x384   : > { %1516 = shalt.err (!%p1513_p10)
}
 0x385   : > { %s1517_s22 = scalar_lea.hbm %s2199_s15, 1024  ;;  %s1521_s9 = scalar_lea.hbm %s2255_s7, 2048 }
 0x386   : > { %p1518_p0 = scmp.ne.s32.totalorder %s2199_s15, %s1517_s22  ;;  %p1522_p1 = scmp.lt.s32.totalorder %s2199_s15, %s2255_s7 }
 0x387   : > { %p1523_p3 = scmp.lt.s32.totalorder %s1521_s9, %s1517_s22 }
 0x388   : > { %p1519_p2 = pnand %p1518_p0, %p2268_p12 }
 0x389   : > { %p1524_p6 = por %p1523_p3, %p1522_p1 }
 0x38a   : > { %p1520_p9 = pneg %p1519_p2 }
 0x38c   : > { %p1525_p11 = pnand %p1524_p6, %p1520_p9 }
 0x38e   : > { %1528 = shalt.err (!%p1525_p11)
}
 0x38f   : > { %s1581_s18 = smov 128   ;;  %s1582_s23 = smov 8  }
 0x390   : > { %1405 = dma.vmem_to_hbm [thread:$0]  (%p2268_p12), %s2201_s21, 1024, %s2199_s15, %s1200_s28, %s1581_s18, %s1581_s18, %s1582_s23  }
 0x391 PF: > { %s1228_s8 = sand.u32 1, %s1555_s24   ;;  %p2269_p13 = scmp.ne.s32.totalorder %s2261_s14, 0 }
 0x392   : > { %p2270_p4 = scmp.ge.s32.totalorder %s1567_s27, 2  ;;  %s1229_s16 = scalar_lea.sflag [#allocation4], %s1228_s8 }
 0x394   : > { %p1412_p5 = pnand %p2270_p4, %p2269_p13 }
 0x396   : > { %p1413_p7 = pneg %p1412_p5 }
 0x398   : > { %1550 = dma.done.wait (%p1413_p7), %s1229_s16, 1024  }
 0x399   : > { %1552 = vsyncadd (%p1413_p7), %s1229_s16, 4294966272  ;;  %p20_p8 = scmp.ge.s32.totalorder %s1648_s30, 4   ;;  %s2271_s24 = smov %s1559_s25 }
 0x39a   : > { %s2272_s25 = smov %s1563_s26  ;;  %s2273_s26 = smov %s1660_s10 }
 0x39b   : > { %s2274_s27 = smov %s1648_s30  ;;  %22 = sbr.rel (!%p20_p8) target bundleno = 5 (0x5), region = 93 }
 0x3a0   :  { %1234 = vsyncpa [#allocation3], 1 }
 0x3a1   :  { %1236 = vsyncpa [#allocation3 + $0x1], 1 }
 0x3a2   :  { %1237 = vsyncpa [#allocation4], 1 }
 0x3a3   :  { %1239 = vsyncpa [#allocation4 + $0x1], 1 }

</bundles_post_ra>
